<compile_context>
chip_gen: v6e
topology: v6e:2x2x1
jax: 0.10.0
libtpu: 0.0.40
codegen_flags: <defaults>
</compile_context>

<pallas_src>
import jax
import jax.numpy as jnp
from jax.experimental import pallas as pl
from jax.experimental.pallas import tpu as pltpu

_SUBLANES = 8
_LANES = 128


def _affine_kernel(params_ref, x_ref, o_ref):
    # params_ref : SMEM (3,) f32   -> [w_eff[0], w_eff[1], b_eff]
    # x_ref      : VMEM (16, bl) f32  rows 0-7: feature0, rows 8-15: feature1
    # o_ref      : VMEM (8,  bl) f32  fully dense output slab
    o_ref[...] = (x_ref[0:8, :] * params_ref[0]
                  + x_ref[8:16, :] * params_ref[1]
                  + params_ref[2])


def circle_model_v1(x, w1, b1, w2, b2, *, block_lanes=2048):
    """Forward pass of CircleModelV1 (two stacked Linear layers, no activation).

    x : (B, 2) f32 (PyTorch layout); w1 : (2,5); b1 : (1,5); w2 : (5,1); b2 : (1,1)
    returns (B, 1) f32
    """
    B = x.shape[0]

    # ---- Fold the two affine layers (valid only because there is no activation):
    #   (x @ w1 + b1) @ w2 + b2 == x @ (w1 @ w2) + (b1 @ w2 + b2)
    w_eff = (w1 @ w2).reshape(2).astype(jnp.float32)                     # (2,)
    b_eff = (b1.reshape(1, 5) @ w2 + b2.reshape(1, 1)).reshape(1)        # (1,)
    params = jnp.concatenate([w_eff, b_eff.astype(jnp.float32)])         # (3,)

    # ---- Feature-major, sublane+lane dense view.
    # Round batch up to a multiple of 8*128 so the view is (16, L) with L a
    # multiple of 128.  astype + transpose + pad + reshape are all pure data
    # movement and fuse into a single XLA pass over x.
    chunk = _SUBLANES * _LANES                                            # 1024
    Bp = ((B + chunk - 1) // chunk) * chunk
    xt = x.astype(jnp.float32).T                                          # (2, B)
    if Bp != B:
        xt = jnp.pad(xt, ((0, 0), (0, Bp - B)))
    L = Bp // _SUBLANES
    x16 = xt.reshape(2 * _SUBLANES, L)          # rows 0-7 = f0, rows 8-15 = f1

    # ---- Lane-tile size: big tiles amortize per-step overhead; if everything
    # would fit in one block but the batch is big enough, split into two so the
    # "parallel" axis can shard across v7x's two TensorCores.
    bl = max(_LANES, (int(block_lanes) // _LANES) * _LANES)
    bl = min(bl, L)
    if bl >= L and L > _LANES:
        bl = ((L // 2 + _LANES - 1) // _LANES) * _LANES
    num_blocks = pl.cdiv(L, bl)

    cost = pl.CostEstimate(
        flops=4 * Bp,                   # 2 mul + 2 add per output element
        transcendentals=0,
        bytes_accessed=12 * Bp + 12,    # 8B/elem in + 4B/elem out + params
    )

    out8 = pl.pallas_call(
        _affine_kernel,
        out_shape=jax.ShapeDtypeStruct((_SUBLANES, L), jnp.float32),
        grid_spec=pltpu.PrefetchScalarGridSpec(
            num_scalar_prefetch=0,
            grid=(num_blocks,),
            in_specs=[
                # Folded params: three scalars living in SMEM (no VMEM tile).
                pl.BlockSpec(memory_space=pltpu.MemorySpace.SMEM),
                # Input stream: dense (16, bl) tile per step.
                pl.BlockSpec((2 * _SUBLANES, bl), lambda i: (0, i)),
            ],
            out_specs=pl.BlockSpec((_SUBLANES, bl), lambda i: (0, i)),
        ),
        compiler_params=pltpu.CompilerParams(
            dimension_semantics=("parallel",),
        ),
        cost_estimate=cost,
    )(params, x16)

    # (8, L) flattens row-major to contiguous batch order -> free reshape;
    # slice the padded tail only when B wasn't already a multiple of 1024.
    out = out8.reshape(Bp, 1)
    return out if Bp == B else out[:B]


def init_params(key):
    """PyTorch nn.Linear-style init (U[-1/sqrt(fan_in), 1/sqrt(fan_in)]).

    Stored as (in_features, out_features) so the math is x @ W
    (PyTorch stores (out, in) and computes x @ W.T — same result)."""
    k1, k2, k3, k4 = jax.random.split(key, 4)
    bound1 = 1.0 / jnp.sqrt(2.0)   # fan_in = 2
    bound2 = 1.0 / jnp.sqrt(5.0)   # fan_in = 5
    w1 = jax.random.uniform(k1, (2, 5), jnp.float32, -bound1, bound1)
    b1 = jax.random.uniform(k2, (1, 5), jnp.float32, -bound1, bound1)
    w2 = jax.random.uniform(k3, (5, 1), jnp.float32, -bound2, bound2)
    b2 = jax.random.uniform(k4, (1, 1), jnp.float32, -bound2, bound2)
    return w1, b1, w2, b2


if __name__ == "__main__":
    key = jax.random.PRNGKey(0)
    kx1, kx2, kp = jax.random.split(key, 3)
    w1, b1, w2, b2 = init_params(kp)

    # Case 1: small batch, not a multiple of the 1024-row chunk
    # (exercises the fused pad + trailing output slice), single block.
    B1 = 1000
    x1 = jax.random.normal(kx1, (B1, 2), jnp.float32)
    out1 = jax.block_until_ready(circle_model_v1(x1, w1, b1, w2, b2))
    ref1 = (x1 @ w1 + b1) @ w2 + b2
    assert out1.shape == (B1, 1)
    assert jnp.allclose(out1, ref1, atol=1e-5, rtol=1e-5), float(
        jnp.max(jnp.abs(out1 - ref1)))

    # Case 2: larger batch with a small block_lanes to force a multi-block grid
    # and a partial final lane-block (exercises Pallas' masked tail stores).
    B2 = 3000
    x2 = jax.random.normal(kx2, (B2, 2), jnp.float32)
    out2 = jax.block_until_ready(
        circle_model_v1(x2, w1, b1, w2, b2, block_lanes=256))
    ref2 = (x2 @ w1 + b1) @ w2 + b2
    assert out2.shape == (B2, 1)
    assert jnp.allclose(out2, ref2, atol=1e-5, rtol=1e-5), float(
        jnp.max(jnp.abs(out2 - ref2)))

    print("KERNEL_OK")
</pallas_src>

<mosaic_0001>
module attributes {stable_mosaic.version = 11 : i64} {
  func.func @_affine_kernel(%arg0: i32, %arg1: memref<3xf32, #tpu.memory_space<smem>>, %arg2: memref<16x128xf32, #tpu.memory_space<vmem>>, %arg3: memref<8x128xf32, #tpu.memory_space<vmem>>) attributes {dimension_semantics = [#tpu.dimension_semantics<parallel>], iteration_bounds = array<i64: 1>, scalar_prefetch = 0 : i64, scratch_operands = 0 : i64, tpu.core_type = #tpu.core_type<tc>, window_params = [{transform_indices = @transform_0, window_bounds = array<i64: 3>}, {transform_indices = @transform_1, window_bounds = array<i64: 16, 128>}, {transform_indices = @transform_2, window_bounds = array<i64: 8, 128>}]} {
    %c0 = arith.constant 0 : index
    %c0_0 = arith.constant 0 : index
    %0 = vector.load %arg2[%c0, %c0_0] : memref<16x128xf32, #tpu.memory_space<vmem>>, vector<8x128xf32>
    %c0_1 = arith.constant 0 : index
    %1 = memref.load %arg1[%c0_1] : memref<3xf32, #tpu.memory_space<smem>>
    %2 = vector.broadcast %1 : f32 to vector<8x128xf32>
    %3 = arith.mulf %0, %2 : vector<8x128xf32>
    %c8 = arith.constant 8 : index
    %c0_2 = arith.constant 0 : index
    %4 = vector.load %arg2[%c8, %c0_2] : memref<16x128xf32, #tpu.memory_space<vmem>>, vector<8x128xf32>
    %c1 = arith.constant 1 : index
    %5 = memref.load %arg1[%c1] : memref<3xf32, #tpu.memory_space<smem>>
    %6 = vector.broadcast %5 : f32 to vector<8x128xf32>
    %7 = arith.mulf %4, %6 : vector<8x128xf32>
    %8 = arith.addf %3, %7 : vector<8x128xf32>
    %c2 = arith.constant 2 : index
    %9 = memref.load %arg1[%c2] : memref<3xf32, #tpu.memory_space<smem>>
    %10 = vector.broadcast %9 : f32 to vector<8x128xf32>
    %11 = arith.addf %8, %10 : vector<8x128xf32>
    %c0_3 = arith.constant 0 : index
    %c0_4 = arith.constant 0 : index
    %12 = vector.load %arg3[%c0_3, %c0_4] : memref<8x128xf32, #tpu.memory_space<vmem>>, vector<8x128xf32>
    tpu.vector_store %arg3[%c0_3, %c0_4], %11 {strides = array<i32>} : memref<8x128xf32, #tpu.memory_space<vmem>>, vector<8x128xf32>,
    return
  }
  func.func @transform_0(%arg0: i32) -> i32 {
    %c0_i32 = arith.constant 0 : i32
    %c0_i32_0 = arith.constant 0 : i32
    return %c0_i32 : i32
  }
  func.func @transform_1(%arg0: i32) -> (i32, i32) {
    %c0_i32 = arith.constant 0 : i32
    %c0_i32_0 = arith.constant 0 : i32
    return %c0_i32, %arg0 : i32, i32
  }
  func.func @transform_2(%arg0: i32) -> (i32, i32) {
    %c0_i32 = arith.constant 0 : i32
    %c0_i32_0 = arith.constant 0 : i32
    return %c0_i32, %arg0 : i32, i32
  }
}

</mosaic_0001>

<bundles_post_ra>
// kernel: tpu_custom_call.1
= control target key start
LH: loop header
LB: loop body
LE: loop exit
PB: predicated region body
PF: predicated region fallthrough
CT: control target
= control target key end

     0   :  { %7 = vsyncpa [#allocation5], 0  ;;  %s156_s0 = inlined_call_operand.hbm [shape: f32[3], index: 0, kind: input, shape index: {}]   ;;  %s157_s1 = inlined_call_operand.hbm [shape: f32[16,128], index: 1, kind: input, shape index: {}]   ;;  %s158_s2 = inlined_call_operand.hbm [shape: f32[8,128], index: 2, kind: output, shape index: {}]  }
   0x1   :  { %8 = vsyncpa [#allocation3], 0 }
   0x2   :  { %9 = vsyncpa [#allocation4], 0  ;;  %s127_s9 = smov [#allocation2]   ;;  %s128_s12 = smov [#allocation6]  }
   0x3   :  { %17 = dma.hbm_to_smem %s156_s0, 16, %s127_s9, [#allocation5]  }
   0x4   :  { %s23_s13 = sshll.u32 %s128_s12, 4  ;;  %s24_s13 = int_to_ptr.vmem [resolvable:$true] %s23_s13 }
   0x5   :  { %s89_s14 = scalar_lea.vmem %s24_s13, 256  ;;  %p94_p1 = scmp.lt.s32.totalorder %s24_s13, %s24_s13 }
   0x6   :  { %p90_p0 = scmp.ne.s32.totalorder %s24_s13, %s89_s14  ;;  %p95_p2 = scmp.lt.s32.totalorder %s89_s14, %s89_s14 }
   0x8   :  { %p96_p3 = por %p95_p2, %p94_p1 }
   0xa   :  { %p97_p4 = pnand %p96_p3, %p90_p0 }
   0xc   :  { %100 = shalt.err (!%p97_p4)
}
   0xd   :  { %s129_s15 = smov 128   ;;  %s130_s16 = smov 8  }
   0xe   :  { %29 = dma.hbm_to_vmem [thread:$0]  %s157_s1, 256, %s24_s13, [#allocation3], %s129_s15, %s129_s15, %s130_s16  }
   0xf   :  { %121 = dma.done.wait [#allocation5], 16  }
  0x10   :  { %122 = vsyncadd [#allocation5], 4294967280 }
  0x11   :  { %123 = dma.done.wait [#allocation3], 256  }
  0x12   :  { %124 = vsyncadd [#allocation3], 4294967040 }
  0x13   :  { %36 = sfence }
  0x14   :  { %s38_s0 = sld [smem:[#allocation2]]  ;;  %v37_v0 = vld [vmem:[#allocation6] sm:$0xff]  ;;  %v41_v1 = vld [vmem:[#allocation6 + $0x8] sm:$0xff]  ;;  %s131_s21 = smov [#allocation7]  }
  0x15   :  { %s66_s19 = sld [smem:[#allocation2 + $0x1]]  ;;  %s56_s22 = sshll.u32 %s131_s21, 4  ;;  %s57_s22 = int_to_ptr.vmem [resolvable:$true] %s56_s22 }
  0x16   :  { %s67_s20 = sld [smem:[#allocation2 + $0x2]]  ;;  %s101_s1 = scalar_lea.vmem %s57_s22, 128 }
  0x17   :  { %p102_p5 = scmp.ne.s32.totalorder %s57_s22, %s101_s1  ;;  %p106_p6 = scmp.lt.s32.totalorder %s57_s22, %s57_s22 }
  0x18   :  { %p107_p7 = scmp.lt.s32.totalorder %s101_s1, %s101_s1 }
  0x1a   :  { %v39_v2 = vstv %s38_s0  ;;  %p108_p8 = por %p107_p7, %p106_p6 }
  0x1b   :  { %v40_v3 = vmul.f32 %v39_v2, %v37_v0  ;;  %v43_v4 = vstv %s66_s19 }
  0x1c   :  { %v44_v5 = vmul.f32 %v43_v4, %v41_v1  ;;  %v47_v6 = vstv %s67_s20  ;;  %p109_p9 = pnand %p108_p8, %p102_p5 }
  0x1e   :  { %v45_v7 = vadd.f32 %v44_v5, %v40_v3 }
  0x20   :  { %v48_v8 = vadd.f32 %v47_v6, %v45_v7 }
  0x22   :  { %49 = vst [vmem:[#allocation7] sm:$0xff] %v48_v8 }
  0x23   :  { %112 = shalt.err (!%p109_p9)
}
  0x24   :  { %59 = dma.vmem_to_hbm [thread:$0]  %s57_s22, 128, %s158_s2, [#allocation4]  }
  0x25   :  { %125 = dma.done.wait [#allocation4], 128  }
  0x26   :  { %126 = vsyncadd [#allocation4], 4294967168 }
  0x27   :  { %63 = vsyncpa [#allocation3], 1 }
  0x28   :  { %64 = vsyncpa [#allocation4], 1 }
  0x29   :  { %65 = vsyncpa [#allocation5], 1 }

</bundles_post_ra>
